<compile_context>
chip_gen: v7x
topology: tpu7x:2x2x1
jax: 0.10.0
libtpu: 0.0.40
codegen_flags: <defaults>
</compile_context>

<pallas_src>
import jax
import jax.numpy as jnp
from jax.experimental import pallas as pl
from jax.experimental.pallas import tpu as pltpu

HIGHEST = jax.lax.Precision.HIGHEST
LANE = 128
SUBLANE = 8


def _round_up(x, m):
    return (x + m - 1) // m * m


def make_network_kernel(num_hidden_layers):
    """Fused forward pass for one (tb, P) batch tile.

    x_ref  : (tb, P)     f32 activations, feature dim zero-padded to P
    wg_ref : (P, 2P)     bf16 merged GLU weight [ value half | gate half ]
    wm_ref : (L, P, P)   bf16 main weights [layers..., w_vo, w_s, w_out]
    b_ref  : (R, P)      f32 biases [b_a, b_g, layers..., b_vo, b_s, b_out, pad]
    out_ref: (tb, P)     f32 output slab (first out_dim lanes valid)
    """

    def kernel(x_ref, wg_ref, wm_ref, b_ref, out_ref):
        P = out_ref.shape[1]
        x = x_ref[...]

        def lin(i, inp):
            # bf16 MXU operands, f32 accumulation, f32 bias add.
            return (jnp.dot(inp.astype(jnp.bfloat16), wm_ref[i],
                            preferred_element_type=jnp.float32)
                    + b_ref[i + 2:i + 3, :])

        # first_layer + GLU: one (tb,P)x(P,2P) matmul; the value / gate halves
        # sit in separate 128-lane groups, so the split below is shuffle-free.
        glu = jnp.dot(x.astype(jnp.bfloat16), wg_ref[...],
                      preferred_element_type=jnp.float32)
        a = glu[:, :P] + b_ref[0:1, :]
        g = glu[:, P:] + b_ref[1:2, :]
        h = a * jax.nn.sigmoid(g)            # elementwise kept in f32 (v5e VPU/EUP)

        # self.layers: Linear + ReLU stack
        for l in range(num_hidden_layers):
            h = jnp.maximum(lin(l, h), 0.0)

        # MultiheadAttention with seq_len == 1: softmax over a single key is
        # exactly 1, so it reduces to out_proj(v_proj(h)); the two projections
        # were fused host-side into one (P, P) matrix.
        attn = lin(num_hidden_layers, h)

        # second_last_output_layer + ReLU, then output_layer
        s = jnp.maximum(lin(num_hidden_layers + 1, attn), 0.0)
        out_ref[...] = lin(num_hidden_layers + 2, s)

    return kernel


def pack_params(params, num_layers):
    """Host-side fusion + packing into bf16 weight slabs and an f32 bias slab."""
    d_in = params["w_first"].shape[0]
    out_dim = params["w_out"].shape[1]

    all_dims = [d_in, out_dim]
    for w in [params["w_first"]] + list(params["w_layers"]) + [
            params["w_v"], params["w_o"], params["w_s"], params["w_out"]]:
        all_dims += list(w.shape)
    P = _round_up(max(all_dims), LANE)          # lane-dense padding (>= 128)

    def pad_w(w):
        return jnp.pad(w.astype(jnp.float32),
                       ((0, P - w.shape[0]), (0, P - w.shape[1])))

    def pad_b(b):
        b = b.astype(jnp.float32).reshape(-1)
        return jnp.pad(b, (0, P - b.size))

    # GLU halves (value / gate) merged into one (P, 2P) weight, each half in
    # its own 128-lane group -> no unaligned column slice in the kernel.
    w_a, w_g = params["w_first"][:, :d_in], params["w_first"][:, d_in:]
    b_a, b_g = params["b_first"][:d_in], params["b_first"][d_in:]
    w_glu = jnp.concatenate([pad_w(w_a), pad_w(w_g)], axis=1).astype(jnp.bfloat16)

    # Fold attention (exact for seq_len == 1):
    #   out = x @ (w_v @ w_o) + (b_v @ w_o + b_o)
    w_vo = jnp.dot(params["w_v"], params["w_o"], precision=HIGHEST)
    b_vo = jnp.dot(params["b_v"], params["w_o"], precision=HIGHEST) + params["b_o"]

    ws = list(params["w_layers"]) + [w_vo, params["w_s"], params["w_out"]]
    bs = ([b_a, b_g] + list(params["b_layers"])
          + [b_vo, params["b_s"], params["b_out"]])

    w_main = jnp.stack([pad_w(w) for w in ws]).astype(jnp.bfloat16)  # (L, P, P)
    n_rows = _round_up(len(bs), SUBLANE)
    b_slab = jnp.stack([pad_b(b) for b in bs]
                       + [jnp.zeros((P,), jnp.float32)] * (n_rows - len(bs)))

    return {"w_glu": w_glu, "w_main": w_main, "b_slab": b_slab,
            "P": P, "d_in": d_in, "out_dim": out_dim,
            "num_hidden_layers": num_layers}


def network_forward(x, packed):
    P, d_in, out_dim = packed["P"], packed["d_in"], packed["out_dim"]
    B = x.shape[0]
    assert x.shape[1] == d_in

    # Batch tiling:
    #  * B <= 128: one grid step (this regime is launch/DMA-latency bound).
    #  * larger B: >= 2 grid steps so v7x's two TensorCores split the batch
    #    ("parallel" axis), capped at 256 rows so the ~3 live (tb, P) f32
    #    intermediates stay within the 64-vreg file instead of spilling.
    if B <= 128:
        tb = _round_up(B, SUBLANE)
    else:
        tb = min(256, _round_up(pl.cdiv(B, 2), SUBLANE))
    Bp = _round_up(B, tb)
    x_p = jnp.pad(x.astype(jnp.float32), ((0, Bp - B), (0, P - d_in)))

    kernel = make_network_kernel(packed["num_hidden_layers"])
    out = pl.pallas_call(
        kernel,
        out_shape=jax.ShapeDtypeStruct((Bp, P), jnp.float32),
        grid=(Bp // tb,),
        in_specs=[
            pl.BlockSpec((tb, P), lambda i: (i, 0)),
            # Constant index maps: slabs DMA'd once, VMEM-resident across tiles.
            pl.BlockSpec(packed["w_glu"].shape, lambda i: (0, 0)),
            pl.BlockSpec(packed["w_main"].shape, lambda i: (0, 0, 0)),
            pl.BlockSpec(packed["b_slab"].shape, lambda i: (0, 0)),
        ],
        out_specs=pl.BlockSpec((tb, P), lambda i: (i, 0)),
        compiler_params=pltpu.CompilerParams(
            dimension_semantics=("parallel",)),
    )(x_p, packed["w_glu"], packed["w_main"], packed["b_slab"])
    return out[:B, :out_dim]


def make_params(key, input_shape, output_shape, num_layers, hidden_size):
    """Deterministic synthetic params. Linear weights stored as (in, out)."""
    ks = iter(jax.random.split(key, 16 + 2 * num_layers))

    def init(shape, scale=0.1):
        return (scale * jax.random.normal(next(ks), shape)).astype(jnp.float32)

    E = hidden_size
    # nn.MultiheadAttention stores in_proj as (3E, E); only the V rows matter
    # on the seq_len == 1 path.
    in_proj_w = init((3 * E, E))
    in_proj_b = init((3 * E,))

    dims = [input_shape] + [E] * num_layers
    w_layers = [init((dims[i], dims[i + 1])) for i in range(num_layers)]
    b_layers = [init((dims[i + 1],)) for i in range(num_layers)]

    return {
        "w_first": init((input_shape, 2 * input_shape)),
        "b_first": init((2 * input_shape,)),
        "w_layers": w_layers,
        "b_layers": b_layers,
        "w_v": jnp.transpose(in_proj_w[2 * E:3 * E, :]),
        "b_v": in_proj_b[2 * E:3 * E],
        "w_o": init((E, E)),
        "b_o": init((E,)),
        "w_s": init((E, E)),
        "b_s": init((E,)),
        "w_out": init((E, output_shape)),
        "b_out": init((output_shape,)),
    }


def reference_forward(x, p):
    """Plain-JAX reference (unfused, full f32 HIGHEST precision)."""
    def dot(a, b):
        return jnp.dot(a, b, precision=HIGHEST)

    d = x.shape[-1]
    h = dot(x, p["w_first"]) + p["b_first"]
    y = h[:, :d] * jax.nn.sigmoid(h[:, d:])
    for w, b in zip(p["w_layers"], p["b_layers"]):
        y = jnp.maximum(dot(y, w) + b, 0.0)
    v = dot(y, p["w_v"]) + p["b_v"]
    attn = dot(v, p["w_o"]) + p["b_o"]
    s = jnp.maximum(dot(attn, p["w_s"]) + p["b_s"], 0.0)
    return dot(s, p["w_out"]) + p["b_out"]


if __name__ == "__main__":
    # Module hyperparams: input_shape=32, output_shape=8, num_layers=2,
    # hidden_size=32 (divisible by the 8 attention heads), batch=8.
    B, D_IN, HID, D_OUT, NUM_LAYERS = 8, 32, 32, 8, 2

    key = jax.random.PRNGKey(0)
    k_x, k_p = jax.random.split(key)
    x = jax.random.normal(k_x, (B, D_IN), dtype=jnp.float32)
    params = make_params(k_p, D_IN, D_OUT, NUM_LAYERS, HID)
    packed = pack_params(params, NUM_LAYERS)

    out = network_forward(x, packed)
    out = jax.block_until_ready(out)

    ref = reference_forward(x, params)
    assert out.shape == (B, D_OUT)
    # bf16 MXU operands (f32 accumulation) vs an f32-HIGHEST reference.
    err = float(jnp.max(jnp.abs(out - ref)))
    assert jnp.allclose(out, ref, atol=2e-2, rtol=2e-2), f"max abs err {err}"

    print("KERNEL_OK")
</pallas_src>

<mosaic_0001>
module attributes {stable_mosaic.version = 11 : i64} {
  func.func @kernel(%arg0: i32, %arg1: memref<8x128xf32, #tpu.memory_space<vmem>>, %arg2: memref<128x256xbf16, #tpu.memory_space<vmem>>, %arg3: memref<5x128x128xbf16, #tpu.memory_space<vmem>>, %arg4: memref<8x128xf32, #tpu.memory_space<vmem>>, %arg5: memref<8x128xf32, #tpu.memory_space<vmem>>) attributes {dimension_semantics = [#tpu.dimension_semantics<parallel>], iteration_bounds = array<i64: 1>, scalar_prefetch = 0 : i64, scratch_operands = 0 : i64, tpu.core_type = #tpu.core_type<tc>, window_params = [{transform_indices = @transform_0, window_bounds = array<i64: 8, 128>}, {pipeline_mode = #tpu.pipeline_mode<synchronous>, transform_indices = @transform_1, window_bounds = array<i64: 128, 256>}, {pipeline_mode = #tpu.pipeline_mode<synchronous>, transform_indices = @transform_2, window_bounds = array<i64: 5, 128, 128>}, {pipeline_mode = #tpu.pipeline_mode<synchronous>, transform_indices = @transform_3, window_bounds = array<i64: 8, 128>}, {transform_indices = @transform_4, window_bounds = array<i64: 8, 128>}]} {
    %c0 = arith.constant 0 : index
    %c0_0 = arith.constant 0 : index
    %0 = vector.load %arg1[%c0, %c0_0] : memref<8x128xf32, #tpu.memory_space<vmem>>, vector<8x128xf32>
    %1 = arith.truncf %0 : vector<8x128xf32> to vector<8x128xbf16>
    %c0_1 = arith.constant 0 : index
    %c0_2 = arith.constant 0 : index
    %2 = vector.load %arg2[%c0_1, %c0_2] : memref<128x256xbf16, #tpu.memory_space<vmem>>, vector<128x256xbf16>
    %cst = arith.constant dense<0.000000e+00> : vector<8x256xf32>
    %3 = tpu.matmul %1, %2, %cst {dimension_numbers = #tpu.dot_dimension_numbers<[1], [0], [0], [1], [0, 0, 1, 1], [], []>} : vector<8x128xbf16>, vector<128x256xbf16>, vector<8x256xf32> -> vector<8x256xf32>
    %4 = vector.extract_strided_slice %3 {offsets = [0, 0], sizes = [8, 128], strides = [1, 1]} : vector<8x256xf32> to vector<8x128xf32>
    %c0_3 = arith.constant 0 : index
    %c0_4 = arith.constant 0 : index
    %5 = vector.load %arg4[%c0_3, %c0_4] : memref<8x128xf32, #tpu.memory_space<vmem>>, vector<1x128xf32>
    %6 = vector.broadcast %5 : vector<1x128xf32> to vector<8x128xf32>
    %7 = arith.addf %4, %6 : vector<8x128xf32>
    %8 = vector.extract_strided_slice %3 {offsets = [0, 128], sizes = [8, 128], strides = [1, 1]} : vector<8x256xf32> to vector<8x128xf32>
    %c1 = arith.constant 1 : index
    %c0_5 = arith.constant 0 : index
    %9 = vector.load %arg4[%c1, %c0_5] : memref<8x128xf32, #tpu.memory_space<vmem>>, vector<1x128xf32>
    %10 = vector.broadcast %9 : vector<1x128xf32> to vector<8x128xf32>
    %11 = arith.addf %8, %10 : vector<8x128xf32>
    %12 = arith.negf %11 : vector<8x128xf32>
    %13 = math.exp %12 : vector<8x128xf32>
    %cst_6 = arith.constant 1.000000e+00 : f32
    %14 = vector.broadcast %cst_6 : f32 to vector<8x128xf32>
    %15 = arith.addf %14, %13 : vector<8x128xf32>
    %16 = arith.divf %14, %15 : vector<8x128xf32>
    %17 = arith.mulf %7, %16 : vector<8x128xf32>
    %18 = arith.truncf %17 : vector<8x128xf32> to vector<8x128xbf16>
    %c0_7 = arith.constant 0 : index
    %c0_8 = arith.constant 0 : index
    %c0_9 = arith.constant 0 : index
    %19 = vector.load %arg3[%c0_7, %c0_8, %c0_9] : memref<5x128x128xbf16, #tpu.memory_space<vmem>>, vector<1x128x128xbf16>
    %20 = vector.shape_cast %19 : vector<1x128x128xbf16> to vector<128x128xbf16>
    %cst_10 = arith.constant dense<0.000000e+00> : vector<8x128xf32>
    %21 = tpu.matmul %18, %20, %cst_10 {dimension_numbers = #tpu.dot_dimension_numbers<[1], [0], [0], [1], [0, 0, 1, 1], [], []>} : vector<8x128xbf16>, vector<128x128xbf16>, vector<8x128xf32> -> vector<8x128xf32>
    %c2 = arith.constant 2 : index
    %c0_11 = arith.constant 0 : index
    %22 = vector.load %arg4[%c2, %c0_11] : memref<8x128xf32, #tpu.memory_space<vmem>>, vector<1x128xf32>
    %23 = vector.broadcast %22 : vector<1x128xf32> to vector<8x128xf32>
    %24 = arith.addf %21, %23 : vector<8x128xf32>
    %cst_12 = arith.constant 0.000000e+00 : f32
    %25 = vector.broadcast %cst_12 : f32 to vector<8x128xf32>
    %26 = arith.maximumf %24, %25 : vector<8x128xf32>
    %27 = arith.truncf %26 : vector<8x128xf32> to vector<8x128xbf16>
    %c1_13 = arith.constant 1 : index
    %c0_14 = arith.constant 0 : index
    %c0_15 = arith.constant 0 : index
    %28 = vector.load %arg3[%c1_13, %c0_14, %c0_15] : memref<5x128x128xbf16, #tpu.memory_space<vmem>>, vector<1x128x128xbf16>
    %29 = vector.shape_cast %28 : vector<1x128x128xbf16> to vector<128x128xbf16>
    %cst_16 = arith.constant dense<0.000000e+00> : vector<8x128xf32>
    %30 = tpu.matmul %27, %29, %cst_16 {dimension_numbers = #tpu.dot_dimension_numbers<[1], [0], [0], [1], [0, 0, 1, 1], [], []>} : vector<8x128xbf16>, vector<128x128xbf16>, vector<8x128xf32> -> vector<8x128xf32>
    %c3 = arith.constant 3 : index
    %c0_17 = arith.constant 0 : index
    %31 = vector.load %arg4[%c3, %c0_17] : memref<8x128xf32, #tpu.memory_space<vmem>>, vector<1x128xf32>
    %32 = vector.broadcast %31 : vector<1x128xf32> to vector<8x128xf32>
    %33 = arith.addf %30, %32 : vector<8x128xf32>
    %cst_18 = arith.constant 0.000000e+00 : f32
    %34 = vector.broadcast %cst_18 : f32 to vector<8x128xf32>
    %35 = arith.maximumf %33, %34 : vector<8x128xf32>
    %36 = arith.truncf %35 : vector<8x128xf32> to vector<8x128xbf16>
    %c2_19 = arith.constant 2 : index
    %c0_20 = arith.constant 0 : index
    %c0_21 = arith.constant 0 : index
    %37 = vector.load %arg3[%c2_19, %c0_20, %c0_21] : memref<5x128x128xbf16, #tpu.memory_space<vmem>>, vector<1x128x128xbf16>
    %38 = vector.shape_cast %37 : vector<1x128x128xbf16> to vector<128x128xbf16>
    %cst_22 = arith.constant dense<0.000000e+00> : vector<8x128xf32>
    %39 = tpu.matmul %36, %38, %cst_22 {dimension_numbers = #tpu.dot_dimension_numbers<[1], [0], [0], [1], [0, 0, 1, 1], [], []>} : vector<8x128xbf16>, vector<128x128xbf16>, vector<8x128xf32> -> vector<8x128xf32>
    %c4 = arith.constant 4 : index
    %c0_23 = arith.constant 0 : index
    %40 = vector.load %arg4[%c4, %c0_23] : memref<8x128xf32, #tpu.memory_space<vmem>>, vector<1x128xf32>
    %41 = vector.broadcast %40 : vector<1x128xf32> to vector<8x128xf32>
    %42 = arith.addf %39, %41 : vector<8x128xf32>
    %43 = arith.truncf %42 : vector<8x128xf32> to vector<8x128xbf16>
    %c3_24 = arith.constant 3 : index
    %c0_25 = arith.constant 0 : index
    %c0_26 = arith.constant 0 : index
    %44 = vector.load %arg3[%c3_24, %c0_25, %c0_26] : memref<5x128x128xbf16, #tpu.memory_space<vmem>>, vector<1x128x128xbf16>
    %45 = vector.shape_cast %44 : vector<1x128x128xbf16> to vector<128x128xbf16>
    %cst_27 = arith.constant dense<0.000000e+00> : vector<8x128xf32>
    %46 = tpu.matmul %43, %45, %cst_27 {dimension_numbers = #tpu.dot_dimension_numbers<[1], [0], [0], [1], [0, 0, 1, 1], [], []>} : vector<8x128xbf16>, vector<128x128xbf16>, vector<8x128xf32> -> vector<8x128xf32>
    %c5 = arith.constant 5 : index
    %c0_28 = arith.constant 0 : index
    %47 = vector.load %arg4[%c5, %c0_28] : memref<8x128xf32, #tpu.memory_space<vmem>>, vector<1x128xf32>
    %48 = vector.broadcast %47 : vector<1x128xf32> to vector<8x128xf32>
    %49 = arith.addf %46, %48 : vector<8x128xf32>
    %cst_29 = arith.constant 0.000000e+00 : f32
    %50 = vector.broadcast %cst_29 : f32 to vector<8x128xf32>
    %51 = arith.maximumf %49, %50 : vector<8x128xf32>
    %52 = arith.truncf %51 : vector<8x128xf32> to vector<8x128xbf16>
    %c4_30 = arith.constant 4 : index
    %c0_31 = arith.constant 0 : index
    %c0_32 = arith.constant 0 : index
    %53 = vector.load %arg3[%c4_30, %c0_31, %c0_32] : memref<5x128x128xbf16, #tpu.memory_space<vmem>>, vector<1x128x128xbf16>
    %54 = vector.shape_cast %53 : vector<1x128x128xbf16> to vector<128x128xbf16>
    %cst_33 = arith.constant dense<0.000000e+00> : vector<8x128xf32>
    %55 = tpu.matmul %52, %54, %cst_33 {dimension_numbers = #tpu.dot_dimension_numbers<[1], [0], [0], [1], [0, 0, 1, 1], [], []>} : vector<8x128xbf16>, vector<128x128xbf16>, vector<8x128xf32> -> vector<8x128xf32>
    %c6 = arith.constant 6 : index
    %c0_34 = arith.constant 0 : index
    %56 = vector.load %arg4[%c6, %c0_34] : memref<8x128xf32, #tpu.memory_space<vmem>>, vector<1x128xf32>
    %57 = vector.broadcast %56 : vector<1x128xf32> to vector<8x128xf32>
    %58 = arith.addf %55, %57 : vector<8x128xf32>
    %c0_35 = arith.constant 0 : index
    %c0_36 = arith.constant 0 : index
    %59 = vector.load %arg5[%c0_35, %c0_36] : memref<8x128xf32, #tpu.memory_space<vmem>>, vector<8x128xf32>
    tpu.vector_store %arg5[%c0_35, %c0_36], %58 {strides = array<i32>} : memref<8x128xf32, #tpu.memory_space<vmem>>, vector<8x128xf32>,
    return
  }
  func.func @transform_0(%arg0: i32) -> (i32, i32) {
    %c0_i32 = arith.constant 0 : i32
    %c0_i32_0 = arith.constant 0 : i32
    return %arg0, %c0_i32 : i32, i32
  }
  func.func @transform_1(%arg0: i32) -> (i32, i32) {
    %c0_i32 = arith.constant 0 : i32
    %c0_i32_0 = arith.constant 0 : i32
    %c0_i32_1 = arith.constant 0 : i32
    return %c0_i32, %c0_i32_0 : i32, i32
  }
  func.func @transform_2(%arg0: i32) -> (i32, i32, i32) {
    %c0_i32 = arith.constant 0 : i32
    %c0_i32_0 = arith.constant 0 : i32
    %c0_i32_1 = arith.constant 0 : i32
    %c0_i32_2 = arith.constant 0 : i32
    return %c0_i32, %c0_i32_0, %c0_i32_1 : i32, i32, i32
  }
  func.func @transform_3(%arg0: i32) -> (i32, i32) {
    %c0_i32 = arith.constant 0 : i32
    %c0_i32_0 = arith.constant 0 : i32
    %c0_i32_1 = arith.constant 0 : i32
    return %c0_i32, %c0_i32_0 : i32, i32
  }
  func.func @transform_4(%arg0: i32) -> (i32, i32) {
    %c0_i32 = arith.constant 0 : i32
    %c0_i32_0 = arith.constant 0 : i32
    return %arg0, %c0_i32 : i32, i32
  }
}

</mosaic_0001>

<bundles_post_ra>
// kernel: tpu_custom_call.1
= control target key start
LH: loop header
LB: loop body
LE: loop exit
PB: predicated region body
PF: predicated region fallthrough
CT: control target
= control target key end

     0   :  { %9 = vsyncpa [#allocation3], 0  ;;  %s1327_s0 = inlined_call_operand.hbm [shape: f32[8,128], index: 0, kind: input, shape index: {}]   ;;  %s1328_s1 = inlined_call_operand.hbm [shape: bf16[128,256], index: 1, kind: input, shape index: {}]   ;;  %s1329_s2 = inlined_call_operand.hbm [shape: bf16[5,128,128], index: 2, kind: input, shape index: {}]   ;;  %s1330_s3 = inlined_call_operand.vmem [shape: f32[8,128], index: 3, kind: input, shape index: {}]   ;;  %s1331_s4 = inlined_call_operand.hbm [shape: f32[8,128], index: 4, kind: output, shape index: {}]  }
   0x1   :  { %10 = vsyncpa [#allocation6], 0 }
   0x2   :  { %11 = vsyncpa [#allocation4], 0  ;;  %s1172_s15 = smov [#allocation5]   ;;  %s1078_s19 = scalar_lea.hbm %s1328_s1, 2048 }
   0x3   :  { %s27_s16 = sshll.u32 %s1172_s15, 4  ;;  %p1079_p0 = scmp.ne.s32.totalorder %s1328_s1, %s1078_s19  ;;  %s28_s16 = int_to_ptr.vmem [resolvable:$true] %s27_s16 }
   0x4   :  { %p1082_p1 = scmp.lt.u32.totalorder %s1078_s19, %s1328_s1 }
   0x6   :  { %p1084_p2 = pnand %p1082_p1, %p1079_p0 }
   0x8   :  { %1087 = shalt.err (!%p1084_p2)
}
   0x9   :  { %s1088_s24 = scalar_lea.vmem %s28_s16, 2048  ;;  %p1093_p4 = scmp.lt.s32.totalorder %s28_s16, %s28_s16 }
   0xa   :  { %p1089_p3 = scmp.ne.s32.totalorder %s28_s16, %s1088_s24  ;;  %p1094_p5 = scmp.lt.s32.totalorder %s1088_s24, %s1088_s24 }
   0xc   :  { %p1095_p6 = por %p1094_p5, %p1093_p4 }
   0xe   :  { %p1096_p7 = pnand %p1095_p6, %p1089_p3 }
  0x10   :  { %1099 = shalt.err (!%p1096_p7)
}
  0x11   :  { %s1173_s25 = smov 128   ;;  %s1174_s26 = smov 8  }
  0x12   :  { %33 = dma.hbm_to_vmem [thread:$0]  %s1328_s1, 2048, %s28_s16, [#allocation6], %s1173_s25, %s1173_s25, %s1174_s26  }
  0x13   :  { %s1175_s29 = smov [#allocation2]   ;;  %s1176_s5 = smov [#allocation7]  }
  0x14   :  { %s18_s30 = sshll.u32 %s1175_s29, 4  ;;  %s39_s6 = sshll.u32 %s1176_s5, 4  ;;  %s19_s30 = int_to_ptr.vmem [resolvable:$true] %s18_s30  ;;  %s40_s6 = int_to_ptr.vmem [resolvable:$true] %s39_s6 }
  0x15   :  { %s1100_s9 = scalar_lea.hbm %s1327_s0, 128 }
  0x16   :  { %p1101_p8 = scmp.ne.s32.totalorder %s1327_s0, %s1100_s9  ;;  %p1104_p9 = scmp.lt.u32.totalorder %s1100_s9, %s1327_s0 }
  0x18   :  { %p1106_p10 = pnand %p1104_p9, %p1101_p8 }
  0x1a   :  { %1109 = shalt.err (!%p1106_p10)
}
  0x1b   :  { %s1110_s1 = scalar_lea.vmem %s19_s30, 128  ;;  %p1115_p12 = scmp.lt.s32.totalorder %s19_s30, %s19_s30 }
  0x1c   :  { %p1111_p11 = scmp.ne.s32.totalorder %s19_s30, %s1110_s1  ;;  %p1116_p13 = scmp.lt.s32.totalorder %s1110_s1, %s1110_s1 }
  0x1e   :  { %p1117_p0 = por %p1116_p13, %p1115_p12 }
  0x20   :  { %p1118_p1 = pnand %p1117_p0, %p1111_p11 }
  0x22   :  { %1121 = shalt.err (!%p1118_p1)
}
  0x23   :  { %21 = dma.hbm_to_vmem [thread:$0]  %s1327_s0, 128, %s19_s30, [#allocation3]  }
  0x24   :  { %s1122_s18 = scalar_lea.hbm %s1329_s2, 5120 }
  0x25   :  { %p1123_p2 = scmp.ne.s32.totalorder %s1329_s2, %s1122_s18  ;;  %p1126_p3 = scmp.lt.u32.totalorder %s1122_s18, %s1329_s2 }
  0x27   :  { %p1128_p4 = pnand %p1126_p3, %p1123_p2 }
  0x29   :  { %1131 = shalt.err (!%p1128_p4)
}
  0x2a   :  { %s1132_s23 = scalar_lea.vmem %s40_s6, 5120  ;;  %p1137_p6 = scmp.lt.s32.totalorder %s40_s6, %s40_s6 }
  0x2b   :  { %p1133_p5 = scmp.ne.s32.totalorder %s40_s6, %s1132_s23  ;;  %p1138_p7 = scmp.lt.s32.totalorder %s1132_s23, %s1132_s23 }
  0x2d   :  { %p1139_p8 = por %p1138_p7, %p1137_p6 }
  0x2f   :  { %p1140_p9 = pnand %p1139_p8, %p1133_p5 }
  0x31   :  { %1143 = shalt.err (!%p1140_p9)
}
  0x32   :  { %s1177_s0 = smov 64   ;;  %s1178_s24 = smov 4  }
  0x33   :  { %45 = dma.hbm_to_vmem [thread:$0]  %s1329_s2, 5120, %s40_s6, [#allocation6], %s1177_s0, %s1177_s0, %s1178_s24  }
  0x34   :  { %1166 = dma.done.wait [#allocation3], 128  }
  0x35   :  { %1167 = vsyncadd [#allocation3], 4294967168 }
  0x36   :  { %1168 = dma.done.wait [#allocation6], 7168  }
  0x37   :  { %1169 = vsyncadd [#allocation6], 4294960128  ;;  %v1179_v0 = vmov 0   ;;  %v1010_v1 = vld [vmem:[#allocation5 + $0x4] ss:$8 sps:$4 sm:$0xff]   ;;  %v58_v17 = vld [vmem:[#allocation2] sm:$0xff] }
  0x38   :  { %188 = vmatprep.mubr.bf16.mxu0 %v1179_v0  ;;  %v1012_v2 = vld [vmem:[#allocation5] ss:$8 sps:$4 sm:$0xff]   ;;  %156 = vmatprep.subr.bf16.mxu0 %v1010_v1  ;;  %v1013_v3 = vld [vmem:[#allocation5 + $0x14] ss:$8 sps:$4 sm:$0xff]   ;;  %v1015_v4 = vld [vmem:[#allocation5 + $0x10] ss:$8 sps:$4 sm:$0xff]   ;;  %v59_v18 = vpack.c.bf16 %v58_v17, %v58_v17 }
  0x39   :  { %157 = vmatpush1.bf16.msra.mxu0 %v1012_v2  ;;  %v1016_v5 = vld [vmem:[#allocation5 + $0x24] ss:$8 sps:$4 sm:$0xff]   ;;  %v1018_v6 = vld [vmem:[#allocation5 + $0x20] ss:$8 sps:$4 sm:$0xff]   ;;  %v1019_v7 = vld [vmem:[#allocation5 + $0x34] ss:$8 sps:$4 sm:$0xff]  }
  0x3a   :  { %158 = vmatprep.subr.bf16.mxu0 %v1013_v3  ;;  %v1021_v8 = vld [vmem:[#allocation5 + $0x30] ss:$8 sps:$4 sm:$0xff]   ;;  %v1022_v9 = vld [vmem:[#allocation5 + $0x44] ss:$8 sps:$4 sm:$0xff]   ;;  %v1024_v10 = vld [vmem:[#allocation5 + $0x40] ss:$8 sps:$4 sm:$0xff]  }
  0x3b   :  { %v1025_v11 = vld [vmem:[#allocation5 + $0x54] ss:$8 sps:$4 sm:$0xff]   ;;  %v1027_v12 = vld [vmem:[#allocation5 + $0x50] ss:$8 sps:$4 sm:$0xff]   ;;  %v1028_v13 = vld [vmem:[#allocation5 + $0x64] ss:$8 sps:$4 sm:$0xff]  }
  0x3c   :  { %v1030_v14 = vld [vmem:[#allocation5 + $0x60] ss:$8 sps:$4 sm:$0xff]   ;;  %v1031_v15 = vld [vmem:[#allocation5 + $0x74] ss:$8 sps:$4 sm:$0xff]   ;;  %v1033_v16 = vld [vmem:[#allocation5 + $0x70] ss:$8 sps:$4 sm:$0xff]  }
  0x3d   :  { %159 = vmatpush1.bf16.msra.mxu0 %v1015_v4  ;;  %v1034_v19 = vld [vmem:[#allocation7] sm:$0xff]   ;;  %v1180_v20 = vmov 0.0   ;;  %v1035_v21 = vld [vmem:[#allocation7 + $0x8] sm:$0xff]   ;;  %v1036_v22 = vld [vmem:[#allocation7 + $0x10] sm:$0xff]   ;;  %vm1181_vm0 = vmmov 0   ;;  %s1182_s1 = smov [#allocation8]  }
  0x3e   :  { %160 = vmatprep.subr.bf16.mxu0 %v1016_v5  ;;  %899 = vmatprep.subr.bf16.mxu1 %v1180_v20  ;;  %v1037_v23 = vld [vmem:[#allocation7 + $0x18] sm:$0xff]   ;;  %v1038_v24 = vld [vmem:[#allocation7 + $0x20] sm:$0xff]   ;;  %v1039_v25 = vld [vmem:[#allocation7 + $0x28] sm:$0xff]   ;;  %s780_s14 = sshll.u32 %s1182_s1, 4  ;;  %s781_s14 = int_to_ptr.vmem [resolvable:$true] %s780_s14 }
  0x3f   :  { %900 = vmatpush3.bf16.msra.mxu1 %v1034_v19  ;;  %915 = vmatprep.mubr.msk.bf16.mxu1 %vm1181_vm0, %v1180_v20  ;;  %v1040_v26 = vld [vmem:[#allocation7 + $0x30] sm:$0xff]   ;;  %v1041_v27 = vld [vmem:[#allocation7 + $0x38] sm:$0xff]   ;;  %v1042_v28 = vld [vmem:[#allocation7 + $0x40] sm:$0xff]   ;;  %s1144_s15 = scalar_lea.vmem %s781_s14, 128  ;;  %p1149_p11 = scmp.lt.s32.totalorder %s781_s14, %s781_s14 }
  0x40   :  { %901 = vmatprep.subr.bf16.mxu1 %v1180_v20  ;;  %v1043_v29 = vld [vmem:[#allocation7 + $0x48] sm:$0xff]   ;;  %v1044_v30 = vld [vmem:[#allocation7 + $0x50] sm:$0xff]   ;;  %v1045_v31 = vld [vmem:[#allocation7 + $0x58] sm:$0xff]   ;;  %p1145_p10 = scmp.ne.s32.totalorder %s781_s14, %s1144_s15  ;;  %p1150_p12 = scmp.lt.s32.totalorder %s1144_s15, %s1144_s15 }
  0x41   :  { %161 = vmatpush1.bf16.msra.mxu0 %v1018_v6  ;;  %v1046_v32 = vld [vmem:[#allocation7 + $0x60] sm:$0xff]   ;;  %v1047_v33 = vld [vmem:[#allocation7 + $0x68] sm:$0xff]   ;;  %v807_v34 = vld [vmem:[%s1330_s3 + $0x1] ss:$0 sm:$0xff] }
  0x42   :  { %162 = vmatprep.subr.bf16.mxu0 %v1019_v7  ;;  %v806_v43 = vld [vmem:[%s1330_s3] ss:$0 sm:$0xff]  ;;  %v1048_v48 = vld [vmem:[#allocation7 + $0x70] sm:$0xff]   ;;  %v1050_v50 = vld [vmem:[#allocation7 + $0x80] sm:$0xff]   ;;  %p1151_p13 = por %p1150_p12, %p1149_p11 }
  0x43   :  { %902 = vmatpush3.bf16.msra.mxu1 %v1035_v21  ;;  %v1049_v49 = vld [vmem:[#allocation7 + $0x78] sm:$0xff]   ;;  %v1051_v51 = vld [vmem:[#allocation7 + $0x88] sm:$0xff]   ;;  %v1052_v52 = vld [vmem:[#allocation7 + $0x90] sm:$0xff]  }
  0x44   :  { %903 = vmatprep.subr.bf16.mxu1 %v1180_v20  ;;  %v1053_v53 = vld [vmem:[#allocation7 + $0x98] sm:$0xff]   ;;  %v1054_v54 = vld [vmem:[#allocation7 + $0xa0] sm:$0xff]   ;;  %v1055_v55 = vld [vmem:[#allocation7 + $0xa8] sm:$0xff]   ;;  %p1152_p0 = pnand %p1151_p13, %p1145_p10 }
  0x45   :  { %163 = vmatpush1.bf16.msra.mxu0 %v1021_v8  ;;  %v809_v56 = vld [vmem:[%s1330_s3 + $0x2] ss:$0 sm:$0xff]  ;;  %v1056_v0 = vld [vmem:[#allocation7 + $0xb0] sm:$0xff]   ;;  %v1058_v2 = vld [vmem:[#allocation7 + $0xc0] sm:$0xff]  }
  0x46   :  { %164 = vmatprep.subr.bf16.mxu0 %v1022_v9  ;;  %v1057_v1 = vld [vmem:[#allocation7 + $0xb8] sm:$0xff]   ;;  %v1059_v3 = vld [vmem:[#allocation7 + $0xc8] sm:$0xff]   ;;  %v1060_v4 = vld [vmem:[#allocation7 + $0xd0] sm:$0xff]  }
  0x47   :  { %904 = vmatpush3.bf16.msra.mxu1 %v1036_v22  ;;  %v1061_v5 = vld [vmem:[#allocation7 + $0xd8] sm:$0xff]   ;;  %v1062_v6 = vld [vmem:[#allocation7 + $0xe0] sm:$0xff]   ;;  %v1063_v7 = vld [vmem:[#allocation7 + $0xe8] sm:$0xff]  }
  0x48   :  { %905 = vmatprep.subr.bf16.mxu1 %v1180_v20  ;;  %v1064_v8 = vld [vmem:[#allocation7 + $0xf0] sm:$0xff]   ;;  %v818_v9 = vld [vmem:[%s1330_s3 + $0x3] ss:$0 sm:$0xff]  ;;  %v1067_v19 = vld [vmem:[#allocation7 + $0x108] sm:$0xff]  }
  0x49   :  { %165 = vmatpush1.bf16.msra.mxu0 %v1024_v10  ;;  %v1065_v17 = vld [vmem:[#allocation7 + $0xf8] sm:$0xff]   ;;  %v1068_v21 = vld [vmem:[#allocation7 + $0x110] sm:$0xff]  }
  0x4a   :  { %166 = vmatprep.subr.bf16.mxu0 %v1025_v11  ;;  %v1069_v22 = vld [vmem:[#allocation7 + $0x118] sm:$0xff]  }
  0x4b   :  { %906 = vmatpush3.bf16.msra.mxu1 %v1037_v23  ;;  %v1070_v23 = vld [vmem:[#allocation7 + $0x120] sm:$0xff]  }
  0x4c   :  { %907 = vmatprep.subr.bf16.mxu1 %v1180_v20 }
  0x4d   :  { %167 = vmatpush1.bf16.msra.mxu0 %v1027_v12 }
  0x4e   :  { %168 = vmatprep.subr.bf16.mxu0 %v1028_v13 }
  0x4f   :  { %908 = vmatpush3.bf16.msra.mxu1 %v1038_v24  ;;  %v1071_v24 = vld [vmem:[#allocation7 + $0x128] sm:$0xff]  }
  0x50   :  { %909 = vmatprep.subr.bf16.mxu1 %v1180_v20 }
  0x51   :  { %169 = vmatpush1.bf16.msra.mxu0 %v1030_v14 }
  0x52   :  { %170 = vmatprep.subr.bf16.mxu0 %v1031_v15 }
  0x53   :  { %910 = vmatpush3.bf16.msra.mxu1 %v1039_v25  ;;  %v827_v25 = vld [vmem:[%s1330_s3 + $0x4] ss:$0 sm:$0xff] }
  0x54   :  { %911 = vmatprep.subr.bf16.mxu1 %v1180_v20 }
  0x55   :  { %171 = vmatpush1.bf16.msra.mxu0 %v1033_v16 }
  0x56   :  { %919 = vmatprep.subr.bf16.mxu0 %v1180_v20 }
  0x57   :  { %912 = vmatpush3.bf16.msra.mxu1 %v1040_v26 }
  0x58   :  { %189 = vmatmul.mubr.bf16.vlgmr.msra.gmra.mrb[0].mxu0 %v59_v18  ;;  %913 = vmatprep.subr.bf16.mxu1 %v1180_v20  ;;  %v1066_v18 = vld [vmem:[#allocation7 + $0x100] sm:$0xff]  }
  0x59   :  { %935 = vmatprep.mubr.msk.bf16.mxu0 %vm1181_vm0, %v1180_v20  ;;  %920 = vmatpush3.bf16.msra.mxu0 %v1042_v28 }
  0x5a   :  { %921 = vmatprep.subr.bf16.mxu0 %v1180_v20 }
  0x5b   :  { %914 = vmatpush3.bf16.msra.mxu1 %v1041_v27 }
  0x5c   :  { %939 = vmatprep.subr.bf16.mxu1 %v1180_v20 }
  0x5d   :  { %922 = vmatpush3.bf16.msra.mxu0 %v1043_v29 }
  0x5e   :  { %923 = vmatprep.subr.bf16.mxu0 %v1180_v20 }
  0x61   :  { %924 = vmatpush3.bf16.msra.mxu0 %v1044_v30 }
  0x62   :  { %925 = vmatprep.subr.bf16.mxu0 %v1180_v20 }
  0x65   :  { %926 = vmatpush3.bf16.msra.mxu0 %v1045_v31 }
  0x66   :  { %927 = vmatprep.subr.bf16.mxu0 %v1180_v20 }
  0x69   :  { %928 = vmatpush3.bf16.msra.mxu0 %v1046_v32  ;;  %v1072_v32 = vld [vmem:[#allocation7 + $0x130] sm:$0xff]  }
  0x6a   :  { %929 = vmatprep.subr.bf16.mxu0 %v1180_v20 }
  0x6d   :  { %930 = vmatpush3.bf16.msra.mxu0 %v1047_v33  ;;  %v1073_v33 = vld [vmem:[#allocation7 + $0x138] sm:$0xff]  }
  0x6e   :  { %931 = vmatprep.subr.bf16.mxu0 %v1180_v20 }
  0x71   :  { %932 = vmatpush3.bf16.msra.mxu0 %v1048_v48 }
  0x72   :  { %933 = vmatprep.subr.bf16.mxu0 %v1180_v20 }
  0x75   :  { %934 = vmatpush3.bf16.msra.mxu0 %v1049_v49 }
  0x76   :  { %959 = vmatprep.subr.bf16.mxu0 %v1180_v20 }
 0x12b   :  { %v190_v35 = vpop.f32.mrb[0].mxu0 }
 0x12c   :  { %v192_v36 = vpop.f32.mrb[1].mxu0  ;;  %v202_v44 = vadd.f32 %v806_v43, %v190_v35 }
 0x12d   :  { %v208_v37 = vadd.f32 %v807_v34, %v192_v36  ;;  %v194_v38 = vpop.f32.mrb[2].mxu0  ;;  %v836_v34 = vld [vmem:[%s1330_s3 + $0x5] ss:$0 sm:$0xff] }
 0x12e   :  { %v195_v39 = vpop.f32.mrb[3].mxu0 }
 0x12f   :  { %v808_v40 = vmul.f32 -1.442695, %v208_v37 }
 0x131   :  { %1074 = vpow2.f32 %v808_v40 }
 0x13b   :  { %v1075_v41 = vpop.eup %1074 }
 0x13c   :  { %v212_v42 = vadd.f32 1.0, %v1075_v41 }
 0x13e   :  { %1076 = vrcp.f32 %v212_v42  ;;  %v845_v42 = vld [vmem:[%s1330_s3 + $0x6] ss:$0 sm:$0xff] }
 0x148   :  { %v1077_v45 = vpop.eup %1076 }
 0x149   :  { %v215_v46 = vmul.f32 %v1077_v45, %v202_v44 }
 0x14b   :  { %v216_v47 = vpack.c.bf16 %v215_v46, %v215_v46 }
 0x14d   :  { %916 = vmatmul.mubr.bf16.vlgmr.msra.gmra.mrb[0].mxu1 %v216_v47 }
 0x14e   :  { %955 = vmatprep.mubr.msk.bf16.mxu1 %vm1181_vm0, %v1180_v20  ;;  %940 = vmatpush3.bf16.msra.mxu1 %v1050_v50 }
 0x14f   :  { %941 = vmatprep.subr.bf16.mxu1 %v1180_v20 }
 0x152   :  { %942 = vmatpush3.bf16.msra.mxu1 %v1051_v51 }
 0x153   :  { %943 = vmatprep.subr.bf16.mxu1 %v1180_v20 }
 0x156   :  { %944 = vmatpush3.bf16.msra.mxu1 %v1052_v52 }
 0x157   :  { %945 = vmatprep.subr.bf16.mxu1 %v1180_v20 }
 0x15a   :  { %946 = vmatpush3.bf16.msra.mxu1 %v1053_v53 }
 0x15b   :  { %947 = vmatprep.subr.bf16.mxu1 %v1180_v20 }
 0x15e   :  { %948 = vmatpush3.bf16.msra.mxu1 %v1054_v54 }
 0x15f   :  { %949 = vmatprep.subr.bf16.mxu1 %v1180_v20 }
 0x162   :  { %950 = vmatpush3.bf16.msra.mxu1 %v1055_v55 }
 0x163   :  { %951 = vmatprep.subr.bf16.mxu1 %v1180_v20 }
 0x166   :  { %952 = vmatpush3.bf16.msra.mxu1 %v1056_v0 }
 0x167   :  { %953 = vmatprep.subr.bf16.mxu1 %v1180_v20 }
 0x16a   :  { %954 = vmatpush3.bf16.msra.mxu1 %v1057_v1 }
 0x16b   :  { %979 = vmatprep.subr.bf16.mxu1 %v1180_v20 }
 0x220   :  { %v320_v57 = vpop.f32.mrb[0].mxu1 }
 0x221   :  { %v321_v58 = vadd.f32 %v809_v56, %v320_v57  ;;  %v917_v59 = vpop.f32.mrb[1].mxu1 }
 0x222   :  { %v323_v60 = vpop.f32.mrb[2].mxu1 }
 0x223   :  { %v326_v61 = vmax.f32 %v321_v58, 0.0  ;;  %v918_v62 = vpop.f32.mrb[3].mxu1 }
 0x225   :  { %v327_v63 = vpack.c.bf16 %v326_v61, %v326_v61 }
 0x227   :  { %936 = vmatmul.mubr.bf16.vlgmr.msra.gmra.mrb[4].mxu0 %v327_v63 }
 0x228   :  { %975 = vmatprep.mubr.msk.bf16.mxu0 %vm1181_vm0, %v1180_v20  ;;  %960 = vmatpush3.bf16.msra.mxu0 %v1058_v2 }
 0x229   :  { %961 = vmatprep.subr.bf16.mxu0 %v1180_v20 }
 0x22c   :  { %962 = vmatpush3.bf16.msra.mxu0 %v1059_v3 }
 0x22d   :  { %963 = vmatprep.subr.bf16.mxu0 %v1180_v20 }
 0x230   :  { %964 = vmatpush3.bf16.msra.mxu0 %v1060_v4 }
 0x231   :  { %965 = vmatprep.subr.bf16.mxu0 %v1180_v20 }
 0x234   :  { %966 = vmatpush3.bf16.msra.mxu0 %v1061_v5 }
 0x235   :  { %967 = vmatprep.subr.bf16.mxu0 %v1180_v20 }
 0x238   :  { %968 = vmatpush3.bf16.msra.mxu0 %v1062_v6 }
 0x239   :  { %969 = vmatprep.subr.bf16.mxu0 %v1180_v20 }
 0x23c   :  { %970 = vmatpush3.bf16.msra.mxu0 %v1063_v7 }
 0x23d   :  { %971 = vmatprep.subr.bf16.mxu0 %v1180_v20 }
 0x240   :  { %972 = vmatpush3.bf16.msra.mxu0 %v1064_v8 }
 0x241   :  { %973 = vmatprep.subr.bf16.mxu0 %v1180_v20 }
 0x244   :  { %974 = vmatpush3.bf16.msra.mxu0 %v1065_v17 }
 0x2fa   :  { %v432_v10 = vpop.f32.mrb[4].mxu0 }
 0x2fb   :  { %v433_v11 = vadd.f32 %v818_v9, %v432_v10  ;;  %v937_v12 = vpop.f32.mrb[5].mxu0 }
 0x2fc   :  { %v435_v13 = vpop.f32.mrb[6].mxu0 }
 0x2fd   :  { %v438_v14 = vmax.f32 %v433_v11, 0.0  ;;  %v938_v15 = vpop.f32.mrb[7].mxu0 }
 0x2ff   :  { %v439_v16 = vpack.c.bf16 %v438_v14, %v438_v14 }
 0x301   :  { %956 = vmatmul.mubr.bf16.vlgmr.msra.gmra.mrb[4].mxu1 %v439_v16 }
 0x302   :  { %995 = vmatprep.mubr.msk.bf16.mxu1 %vm1181_vm0, %v1180_v20  ;;  %980 = vmatpush3.bf16.msra.mxu1 %v1066_v18 }
 0x303   :  { %981 = vmatprep.subr.bf16.mxu1 %v1180_v20 }
 0x306   :  { %982 = vmatpush3.bf16.msra.mxu1 %v1067_v19 }
 0x307   :  { %983 = vmatprep.subr.bf16.mxu1 %v1180_v20 }
 0x30a   :  { %984 = vmatpush3.bf16.msra.mxu1 %v1068_v21 }
 0x30b   :  { %985 = vmatprep.subr.bf16.mxu1 %v1180_v20 }
 0x30e   :  { %986 = vmatpush3.bf16.msra.mxu1 %v1069_v22 }
 0x30f   :  { %987 = vmatprep.subr.bf16.mxu1 %v1180_v20 }
 0x312   :  { %988 = vmatpush3.bf16.msra.mxu1 %v1070_v23 }
 0x313   :  { %989 = vmatprep.subr.bf16.mxu1 %v1180_v20 }
 0x316   :  { %990 = vmatpush3.bf16.msra.mxu1 %v1071_v24 }
 0x317   :  { %991 = vmatprep.subr.bf16.mxu1 %v1180_v20 }
 0x31a   :  { %992 = vmatpush3.bf16.msra.mxu1 %v1072_v32 }
 0x31b   :  { %993 = vmatprep.subr.bf16.mxu1 %v1180_v20 }
 0x31e   :  { %994 = vmatpush3.bf16.msra.mxu1 %v1073_v33 }
 0x3d4   :  { %v544_v26 = vpop.f32.mrb[4].mxu1 }
 0x3d5   :  { %v545_v27 = vadd.f32 %v827_v25, %v544_v26  ;;  %v957_v28 = vpop.f32.mrb[5].mxu1 }
 0x3d6   :  { %v547_v29 = vpop.f32.mrb[6].mxu1 }
 0x3d7   :  { %v550_v30 = vpack.c.bf16 %v545_v27, %v545_v27  ;;  %v958_v31 = vpop.f32.mrb[7].mxu1 }
 0x3d9   :  { %976 = vmatmul.mubr.bf16.vlgmr.msra.gmra.mrb[8].mxu0 %v550_v30 }
 0x4ac   :  { %v655_v35 = vpop.f32.mrb[8].mxu0 }
 0x4ad   :  { %v656_v36 = vadd.f32 %v836_v34, %v655_v35  ;;  %v977_v37 = vpop.f32.mrb[9].mxu0 }
 0x4ae   :  { %v658_v38 = vpop.f32.mrb[10].mxu0 }
 0x4af   :  { %v661_v39 = vmax.f32 %v656_v36, 0.0  ;;  %v978_v40 = vpop.f32.mrb[11].mxu0 }
 0x4b1   :  { %v662_v41 = vpack.c.bf16 %v661_v39, %v661_v39 }
 0x4b3   :  { %996 = vmatmul.mubr.bf16.vlgmr.msra.gmra.mrb[8].mxu1 %v662_v41 }
 0x586   :  { %v767_v20 = vpop.f32.mrb[8].mxu1 }
 0x587   :  { %v768_v43 = vadd.f32 %v845_v42, %v767_v20  ;;  %v997_v44 = vpop.f32.mrb[9].mxu1 }
 0x588   :  { %v770_v45 = vpop.f32.mrb[10].mxu1 }
 0x589   :  { %773 = vst [vmem:[#allocation8] sm:$0xff] %v768_v43  ;;  %v998_v46 = vpop.f32.mrb[11].mxu1 }
 0x58a   :  { %1155 = shalt.err (!%p1152_p0)
}
 0x58b   :  { %s1156_s3 = scalar_lea.hbm %s1331_s4, 128 }
 0x58c   :  { %p1157_p1 = scmp.ne.s32.totalorder %s1331_s4, %s1156_s3  ;;  %p1160_p2 = scmp.lt.u32.totalorder %s1156_s3, %s1331_s4 }
 0x58e   :  { %p1162_p3 = pnand %p1160_p2, %p1157_p1 }
 0x590   :  { %1165 = shalt.err (!%p1162_p3)
}
 0x591   :  { %783 = dma.vmem_to_hbm [thread:$0]  %s781_s14, 128, %s1331_s4, [#allocation4]  }
 0x592   :  { %1170 = dma.done.wait [#allocation4], 128  }
 0x593   :  { %1171 = vsyncadd [#allocation4], 4294967168 }
 0x594   :  { %787 = vsyncpa [#allocation3], 1 }
 0x595   :  { %788 = vsyncpa [#allocation6], 1 }
 0x596   :  { %789 = vsyncpa [#allocation4], 1 }

</bundles_post_ra>
